<compile_context>
chip_gen: v7x
topology: tpu7x:2x2x1
jax: 0.10.0
libtpu: 0.0.40
codegen_flags: <defaults>
</compile_context>

<pallas_src>
import jax
import jax.numpy as jnp
from jax.experimental import pallas as pl
from jax.experimental.pallas import tpu as pltpu


def _round_up(x, m):
    return (x + m - 1) // m * m


def _decoder_kernel(
    x_ref,        # (Bp, Vp)        input distribution for step t (f32, zero-padded)
    h0_ref,       # (Bp, Hp)        initial hidden state (f32, zero-padded)
    c0_ref,       # (Bp, Hp)        initial cell state   (f32, zero-padded)
    w_in_ref,     # (Vp, Ip)        dence_in.weight^T    (bf16, zero-padded)
    b_in_ref,     # (1, Ip)         dence_in.bias        (f32, zero-padded)
    w_ih_ref,     # (Ip, 4*Hp)      LSTM w_ih^T, gate-lane-aligned (bf16)
    w_hh_ref,     # (Hp, 4*Hp)      LSTM w_hh^T, gate-lane-aligned (bf16)
    b_lstm_ref,   # (1, 4*Hp)       b_ih + b_hh, gate-lane-aligned (f32)
    w_out_ref,    # (Hp, Vp)        dence_out.weight^T   (bf16, zero-padded)
    b_out_ref,    # (1, Vp)         dence_out.bias, padded lanes = -1e30 (f32)
    logp_ref,     # (Bp, Vp)        log-probabilities for step t
    h1_ref,       # (Bp, Hp)        final hidden state (aliased with h0)
    c1_ref,       # (Bp, Hp)        final cell state   (aliased with c0)
    h_sc,         # VMEM (Bp, Hp) f32 : recurrent h carried across the time grid
    c_sc,         # VMEM (Bp, Hp) f32 : recurrent c carried across the time grid
):
    f32 = jnp.float32
    bf16 = jnp.bfloat16
    Hp = h0_ref.shape[-1]
    t = pl.program_id(0)

    @pl.when(t == 0)
    def _():
        h_sc[...] = h0_ref[...]
        c_sc[...] = c0_ref[...]

    h_prev = h_sc[...]
    c_prev = c_sc[...]

    # dence_in + tanh  (bf16 MXU operands, f32 accumulation & elementwise)
    x_in = jnp.tanh(
        jnp.dot(x_ref[...].astype(bf16), w_in_ref[...], preferred_element_type=f32)
        + b_in_ref[...]
    )

    # single LSTM step: two dots summed into one f32 accumulator (no concat copy).
    # PyTorch gate order i, f, g, o — each gate occupies a lane-aligned Hp block.
    gates = (
        jnp.dot(x_in.astype(bf16), w_ih_ref[...], preferred_element_type=f32)
        + jnp.dot(h_prev.astype(bf16), w_hh_ref[...], preferred_element_type=f32)
        + b_lstm_ref[...]
    )
    i_g = jax.nn.sigmoid(gates[:, 0 * Hp:1 * Hp])
    f_g = jax.nn.sigmoid(gates[:, 1 * Hp:2 * Hp])
    g_g = jnp.tanh(gates[:, 2 * Hp:3 * Hp])
    o_g = jax.nn.sigmoid(gates[:, 3 * Hp:4 * Hp])
    c_new = f_g * c_prev + i_g * g_g
    h_new = o_g * jnp.tanh(c_new)
    h_sc[...] = h_new
    c_sc[...] = c_new

    # dence_out + log_softmax(dim=-1); padded vocab lanes have bias -1e30 -> exp == 0
    logits = (
        jnp.dot(h_new.astype(bf16), w_out_ref[...], preferred_element_type=f32)
        + b_out_ref[...]
    )
    m = jnp.max(logits, axis=-1, keepdims=True)
    shifted = logits - m
    lse = jnp.log(jnp.sum(jnp.exp(shifted), axis=-1, keepdims=True))
    logp_ref[...] = shifted - lse

    @pl.when(t == pl.num_programs(0) - 1)
    def _():
        h1_ref[...] = h_new
        c1_ref[...] = c_new


def prepare_params(params):
    """One-time: transpose, sum biases, split gates lane-aligned, pad to (8,128) tiles,
    cast matmul weights to bf16. Do NOT call this per decode step."""
    f32, bf16 = jnp.float32, jnp.bfloat16
    I, V = params["w_in"].shape          # nn.Linear(V, I).weight: (I, V)
    H = params["w_hh"].shape[-1]         # nn.LSTM: w_hh (4H, H)
    Ip, Hp, Vp = _round_up(I, 128), _round_up(H, 128), _round_up(V, 128)

    w_in = jnp.zeros((Vp, Ip), bf16).at[:V, :I].set(params["w_in"].T.astype(bf16))
    b_in = jnp.zeros((1, Ip), f32).at[0, :I].set(params["b_in"])

    w_ih_t = jnp.zeros((Ip, 4 * Hp), bf16)
    w_hh_t = jnp.zeros((Hp, 4 * Hp), bf16)
    b_lstm = jnp.zeros((1, 4 * Hp), f32)
    b_sum = params["b_ih"] + params["b_hh"]
    for g in range(4):  # PyTorch gate order i, f, g, o
        wg_ih = params["w_ih"][g * H:(g + 1) * H, :]   # (H, I)
        wg_hh = params["w_hh"][g * H:(g + 1) * H, :]   # (H, H)
        w_ih_t = w_ih_t.at[:I, g * Hp:g * Hp + H].set(wg_ih.T.astype(bf16))
        w_hh_t = w_hh_t.at[:H, g * Hp:g * Hp + H].set(wg_hh.T.astype(bf16))
        b_lstm = b_lstm.at[0, g * Hp:g * Hp + H].set(b_sum[g * H:(g + 1) * H])

    w_out = jnp.zeros((Hp, Vp), bf16).at[:H, :V].set(params["w_out"].T.astype(bf16))
    b_out = jnp.full((1, Vp), -1e30, f32).at[0, :V].set(params["b_out"])

    return {
        "w_in": w_in, "b_in": b_in,
        "w_ih": w_ih_t, "w_hh": w_hh_t, "b_lstm": b_lstm,
        "w_out": w_out, "b_out": b_out,
    }


@jax.jit
def decoder_forward(X, hidden_state, prep):
    """X: (B, S, V); hidden_state: (h, c), each (1, B, H).
    Returns (logp (B, S, V), (h1, c1)).  All S LSTM steps run inside one pallas_call."""
    h0, c0 = hidden_state
    B, S, V = X.shape
    H = h0.shape[-1]
    Vp, Ip = prep["w_in"].shape
    Hp = prep["w_out"].shape[0]
    Bp = _round_up(B, 8)

    # Pad once per call (not per step); time-major layout (S, Bp, Vp).
    x = jnp.zeros((S, Bp, Vp), jnp.float32).at[:, :B, :V].set(
        jnp.transpose(X, (1, 0, 2)).astype(jnp.float32))
    h = jnp.zeros((Bp, Hp), jnp.float32).at[:B, :H].set(h0.reshape(B, H).astype(jnp.float32))
    c = jnp.zeros((Bp, Hp), jnp.float32).at[:B, :H].set(c0.reshape(B, H).astype(jnp.float32))

    const2 = lambda t: (0, 0)

    grid_spec = pltpu.PrefetchScalarGridSpec(
        num_scalar_prefetch=0,
        grid=(S,),
        in_specs=[
            pl.BlockSpec((None, Bp, Vp), lambda t: (t, 0, 0)),   # x step t
            pl.BlockSpec((Bp, Hp), const2),                      # h0 (loaded once)
            pl.BlockSpec((Bp, Hp), const2),                      # c0 (loaded once)
            pl.BlockSpec((Vp, Ip), const2),                      # w_in   (VMEM-resident)
            pl.BlockSpec((1, Ip), const2),                       # b_in
            pl.BlockSpec((Ip, 4 * Hp), const2),                  # w_ih^T
            pl.BlockSpec((Hp, 4 * Hp), const2),                  # w_hh^T
            pl.BlockSpec((1, 4 * Hp), const2),                   # b_lstm
            pl.BlockSpec((Hp, Vp), const2),                      # w_out
            pl.BlockSpec((1, Vp), const2),                       # b_out
        ],
        out_specs=[
            pl.BlockSpec((None, Bp, Vp), lambda t: (t, 0, 0)),   # logp per step
            pl.BlockSpec((Bp, Hp), const2),                      # final h
            pl.BlockSpec((Bp, Hp), const2),                      # final c
        ],
        scratch_shapes=[
            pltpu.VMEM((Bp, Hp), jnp.float32),                   # h carry
            pltpu.VMEM((Bp, Hp), jnp.float32),                   # c carry
        ],
    )

    out_shapes = (
        jax.ShapeDtypeStruct((S, Bp, Vp), jnp.float32),  # log-probs
        jax.ShapeDtypeStruct((Bp, Hp), jnp.float32),     # h1
        jax.ShapeDtypeStruct((Bp, Hp), jnp.float32),     # c1
    )

    logp, h1, c1 = pl.pallas_call(
        _decoder_kernel,
        out_shape=out_shapes,
        grid_spec=grid_spec,
        input_output_aliases={1: 1, 2: 2},   # h0 -> h1, c0 -> c1 in place
        compiler_params=pltpu.CompilerParams(dimension_semantics=("arbitrary",)),
    )(
        x, h, c,
        prep["w_in"], prep["b_in"],
        prep["w_ih"], prep["w_hh"], prep["b_lstm"],
        prep["w_out"], prep["b_out"],
    )

    # Slice once after the fused loop.
    logp = jnp.transpose(logp[:, :B, :V], (1, 0, 2))     # (B, S, V)
    h1 = h1[:B, :H].reshape(1, B, H)
    c1 = c1[:B, :H].reshape(1, B, H)
    return logp, (h1, c1)


def init_params(key, input_size, hidden_size, vocab_size):
    """Deterministic synthetic init matching the PyTorch module's parameter shapes."""
    ks = jax.random.split(key, 8)
    u = lambda k, shape, s: jax.random.uniform(k, shape, jnp.float32, -s, s)
    return {
        # nn.Linear(vocab_size, input_size)
        "w_in": u(ks[0], (input_size, vocab_size), 0.1),
        "b_in": u(ks[1], (input_size,), 0.1),
        # nn.LSTM(input_size, hidden_size)
        "w_ih": u(ks[2], (4 * hidden_size, input_size), 0.1),
        "w_hh": u(ks[3], (4 * hidden_size, hidden_size), 0.1),
        "b_ih": u(ks[4], (4 * hidden_size,), 0.1),
        "b_hh": u(ks[5], (4 * hidden_size,), 0.1),
        # nn.Linear(hidden_size, vocab_size)
        "w_out": u(ks[6], (vocab_size, hidden_size), 0.1),
        "b_out": u(ks[7], (vocab_size,), 0.1),
    }


def reference_forward(X, hidden_state, params):
    """Pure-JAX f32 reference matching the PyTorch module (loops over the seq dim)."""
    h0, c0 = hidden_state
    B, S, V = X.shape
    H = h0.shape[-1]
    h = h0.reshape(B, H)
    c = c0.reshape(B, H)
    outs = []
    for t in range(S):
        x = X[:, t, :]
        x_in = jnp.tanh(x @ params["w_in"].T + params["b_in"])
        gates = (x_in @ params["w_ih"].T + h @ params["w_hh"].T
                 + params["b_ih"] + params["b_hh"])
        i = jax.nn.sigmoid(gates[:, 0 * H:1 * H])
        f = jax.nn.sigmoid(gates[:, 1 * H:2 * H])
        g = jnp.tanh(gates[:, 2 * H:3 * H])
        o = jax.nn.sigmoid(gates[:, 3 * H:4 * H])
        c = f * c + i * g
        h = o * jnp.tanh(c)
        logits = h @ params["w_out"].T + params["b_out"]
        outs.append(jax.nn.log_softmax(logits, axis=-1))
    logp = jnp.stack(outs, axis=1)
    return logp, (h.reshape(1, B, H), c.reshape(1, B, H))


if __name__ == "__main__":
    B, V, I, H = 2, 32, 16, 32  # batch, vocabular_size, input_size, hidden_vector_size

    key = jax.random.PRNGKey(0)
    k_x, k_h, k_c, k_p, k_xs = jax.random.split(key, 5)

    params = init_params(k_p, I, H, V)
    prep = prepare_params(params)  # one-time parameter packing (not in the decode path)

    # --- single-step case: exactly the PyTorch module's forward() contract ---
    X = jax.random.normal(k_x, (B, 1, V), jnp.float32)
    h0 = jax.random.normal(k_h, (1, B, H), jnp.float32)
    c0 = jax.random.normal(k_c, (1, B, H), jnp.float32)

    logp, (h1, c1) = decoder_forward(X, (h0, c0), prep)
    jax.block_until_ready((logp, h1, c1))

    assert logp.shape == (B, 1, V) and h1.shape == (1, B, H) and c1.shape == (1, B, H)
    row_sums = jnp.exp(logp).sum(-1)
    assert jnp.allclose(row_sums, 1.0, atol=1e-4), row_sums

    ref_logp, (ref_h1, ref_c1) = reference_forward(X, (h0, c0), params)
    assert jnp.allclose(logp, ref_logp, atol=3e-2), jnp.abs(logp - ref_logp).max()
    assert jnp.allclose(h1, ref_h1, atol=3e-2), jnp.abs(h1 - ref_h1).max()
    assert jnp.allclose(c1, ref_c1, atol=3e-2), jnp.abs(c1 - ref_c1).max()

    # --- fused multi-step case: S steps in one pallas_call, weights VMEM-resident ---
    S = 4
    Xs = jax.random.normal(k_xs, (B, S, V), jnp.float32)
    logp_s, (h1_s, c1_s) = decoder_forward(Xs, (h0, c0), prep)
    jax.block_until_ready((logp_s, h1_s, c1_s))

    ref_logp_s, (ref_h1_s, ref_c1_s) = reference_forward(Xs, (h0, c0), params)
    assert logp_s.shape == (B, S, V)
    assert jnp.allclose(logp_s, ref_logp_s, atol=5e-2), jnp.abs(logp_s - ref_logp_s).max()
    assert jnp.allclose(h1_s, ref_h1_s, atol=5e-2), jnp.abs(h1_s - ref_h1_s).max()
    assert jnp.allclose(c1_s, ref_c1_s, atol=5e-2), jnp.abs(c1_s - ref_c1_s).max()

    print("KERNEL_OK")
</pallas_src>

<mosaic_0001>
module attributes {stable_mosaic.version = 11 : i64} {
  func.func @_decoder_kernel(%arg0: i32, %arg1: memref<1x8x128xf32, #tpu.memory_space<vmem>>, %arg2: memref<8x128xf32, #tpu.memory_space<vmem>>, %arg3: memref<8x128xf32, #tpu.memory_space<vmem>>, %arg4: memref<128x128xbf16, #tpu.memory_space<vmem>>, %arg5: memref<1x128xf32, #tpu.memory_space<vmem>>, %arg6: memref<128x512xbf16, #tpu.memory_space<vmem>>, %arg7: memref<128x512xbf16, #tpu.memory_space<vmem>>, %arg8: memref<1x512xf32, #tpu.memory_space<vmem>>, %arg9: memref<128x128xbf16, #tpu.memory_space<vmem>>, %arg10: memref<1x128xf32, #tpu.memory_space<vmem>>, %arg11: memref<1x8x128xf32, #tpu.memory_space<vmem>>, %arg12: memref<8x128xf32, #tpu.memory_space<vmem>>, %arg13: memref<8x128xf32, #tpu.memory_space<vmem>>, %arg14: memref<8x128xf32, #tpu.memory_space<vmem>>, %arg15: memref<8x128xf32, #tpu.memory_space<vmem>>) attributes {dimension_semantics = [#tpu.dimension_semantics<arbitrary>], iteration_bounds = array<i64: 1>, scalar_prefetch = 0 : i64, scratch_operands = 2 : i64, tpu.core_type = #tpu.core_type<tc>, window_params = [{transform_indices = @transform_0, window_bounds = array<i64: 1, 8, 128>}, {pipeline_mode = #tpu.pipeline_mode<synchronous>, transform_indices = @transform_1, window_bounds = array<i64: 8, 128>}, {pipeline_mode = #tpu.pipeline_mode<synchronous>, transform_indices = @transform_2, window_bounds = array<i64: 8, 128>}, {pipeline_mode = #tpu.pipeline_mode<synchronous>, transform_indices = @transform_3, window_bounds = array<i64: 128, 128>}, {pipeline_mode = #tpu.pipeline_mode<synchronous>, transform_indices = @transform_4, window_bounds = array<i64: 1, 128>}, {pipeline_mode = #tpu.pipeline_mode<synchronous>, transform_indices = @transform_5, window_bounds = array<i64: 128, 512>}, {pipeline_mode = #tpu.pipeline_mode<synchronous>, transform_indices = @transform_6, window_bounds = array<i64: 128, 512>}, {pipeline_mode = #tpu.pipeline_mode<synchronous>, transform_indices = @transform_7, window_bounds = array<i64: 1, 512>}, {pipeline_mode = #tpu.pipeline_mode<synchronous>, transform_indices = @transform_8, window_bounds = array<i64: 128, 128>}, {pipeline_mode = #tpu.pipeline_mode<synchronous>, transform_indices = @transform_9, window_bounds = array<i64: 1, 128>}, {transform_indices = @transform_10, window_bounds = array<i64: 1, 8, 128>}, {pipeline_mode = #tpu.pipeline_mode<synchronous>, transform_indices = @transform_11, window_bounds = array<i64: 8, 128>}, {pipeline_mode = #tpu.pipeline_mode<synchronous>, transform_indices = @transform_12, window_bounds = array<i64: 8, 128>}]} {
    %c0_i32 = arith.constant 0 : i32
    %0 = arith.cmpi eq, %arg0, %c0_i32 : i32
    %1 = arith.extui %0 : i1 to i32
    %c0_i32_0 = arith.constant 0 : i32
    %2 = arith.cmpi ne, %1, %c0_i32_0 : i32
    scf.if %2 {
      %c0_38 = arith.constant 0 : index
      %c0_39 = arith.constant 0 : index
      %73 = vector.load %arg2[%c0_38, %c0_39] : memref<8x128xf32, #tpu.memory_space<vmem>>, vector<8x128xf32>
      %c0_40 = arith.constant 0 : index
      %c0_41 = arith.constant 0 : index
      %74 = vector.load %arg14[%c0_40, %c0_41] : memref<8x128xf32, #tpu.memory_space<vmem>>, vector<8x128xf32>
      tpu.vector_store %arg14[%c0_40, %c0_41], %73 {strides = array<i32>} : memref<8x128xf32, #tpu.memory_space<vmem>>, vector<8x128xf32>,
      %c0_42 = arith.constant 0 : index
      %c0_43 = arith.constant 0 : index
      %75 = vector.load %arg3[%c0_42, %c0_43] : memref<8x128xf32, #tpu.memory_space<vmem>>, vector<8x128xf32>
      %c0_44 = arith.constant 0 : index
      %c0_45 = arith.constant 0 : index
      %76 = vector.load %arg15[%c0_44, %c0_45] : memref<8x128xf32, #tpu.memory_space<vmem>>, vector<8x128xf32>
      tpu.vector_store %arg15[%c0_44, %c0_45], %75 {strides = array<i32>} : memref<8x128xf32, #tpu.memory_space<vmem>>, vector<8x128xf32>,
    } else {
    }
    %c0 = arith.constant 0 : index
    %c0_1 = arith.constant 0 : index
    %3 = vector.load %arg14[%c0, %c0_1] : memref<8x128xf32, #tpu.memory_space<vmem>>, vector<8x128xf32>
    %c0_2 = arith.constant 0 : index
    %c0_3 = arith.constant 0 : index
    %4 = vector.load %arg15[%c0_2, %c0_3] : memref<8x128xf32, #tpu.memory_space<vmem>>, vector<8x128xf32>
    %c0_4 = arith.constant 0 : index
    %c0_5 = arith.constant 0 : index
    %c0_6 = arith.constant 0 : index
    %5 = vector.load %arg1[%c0_4, %c0_5, %c0_6] : memref<1x8x128xf32, #tpu.memory_space<vmem>>, vector<1x8x128xf32>
    %6 = vector.shape_cast %5 : vector<1x8x128xf32> to vector<8x128xf32>
    %7 = arith.truncf %6 : vector<8x128xf32> to vector<8x128xbf16>
    %c0_7 = arith.constant 0 : index
    %c0_8 = arith.constant 0 : index
    %8 = vector.load %arg4[%c0_7, %c0_8] : memref<128x128xbf16, #tpu.memory_space<vmem>>, vector<128x128xbf16>
    %cst = arith.constant dense<0.000000e+00> : vector<8x128xf32>
    %9 = tpu.matmul %7, %8, %cst {dimension_numbers = #tpu.dot_dimension_numbers<[1], [0], [0], [1], [0, 0, 1, 1], [], []>} : vector<8x128xbf16>, vector<128x128xbf16>, vector<8x128xf32> -> vector<8x128xf32>
    %c0_9 = arith.constant 0 : index
    %c0_10 = arith.constant 0 : index
    %10 = vector.load %arg5[%c0_9, %c0_10] : memref<1x128xf32, #tpu.memory_space<vmem>>, vector<1x128xf32>
    %11 = vector.broadcast %10 : vector<1x128xf32> to vector<8x128xf32>
    %12 = arith.addf %9, %11 : vector<8x128xf32>
    %13 = math.tanh %12 : vector<8x128xf32>
    %14 = arith.truncf %13 : vector<8x128xf32> to vector<8x128xbf16>
    %c0_11 = arith.constant 0 : index
    %c0_12 = arith.constant 0 : index
    %15 = vector.load %arg6[%c0_11, %c0_12] : memref<128x512xbf16, #tpu.memory_space<vmem>>, vector<128x512xbf16>
    %cst_13 = arith.constant dense<0.000000e+00> : vector<8x512xf32>
    %16 = tpu.matmul %14, %15, %cst_13 {dimension_numbers = #tpu.dot_dimension_numbers<[1], [0], [0], [1], [0, 0, 1, 1], [], []>} : vector<8x128xbf16>, vector<128x512xbf16>, vector<8x512xf32> -> vector<8x512xf32>
    %17 = arith.truncf %3 : vector<8x128xf32> to vector<8x128xbf16>
    %c0_14 = arith.constant 0 : index
    %c0_15 = arith.constant 0 : index
    %18 = vector.load %arg7[%c0_14, %c0_15] : memref<128x512xbf16, #tpu.memory_space<vmem>>, vector<128x512xbf16>
    %cst_16 = arith.constant dense<0.000000e+00> : vector<8x512xf32>
    %19 = tpu.matmul %17, %18, %cst_16 {dimension_numbers = #tpu.dot_dimension_numbers<[1], [0], [0], [1], [0, 0, 1, 1], [], []>} : vector<8x128xbf16>, vector<128x512xbf16>, vector<8x512xf32> -> vector<8x512xf32>
    %20 = arith.addf %16, %19 : vector<8x512xf32>
    %c0_17 = arith.constant 0 : index
    %c0_18 = arith.constant 0 : index
    %21 = vector.load %arg8[%c0_17, %c0_18] : memref<1x512xf32, #tpu.memory_space<vmem>>, vector<1x512xf32>
    %22 = vector.broadcast %21 : vector<1x512xf32> to vector<8x512xf32>
    %23 = arith.addf %20, %22 : vector<8x512xf32>
    %24 = vector.extract_strided_slice %23 {offsets = [0, 0], sizes = [8, 128], strides = [1, 1]} : vector<8x512xf32> to vector<8x128xf32>
    %25 = arith.negf %24 : vector<8x128xf32>
    %26 = math.exp %25 : vector<8x128xf32>
    %cst_19 = arith.constant 1.000000e+00 : f32
    %27 = vector.broadcast %cst_19 : f32 to vector<8x128xf32>
    %28 = arith.addf %27, %26 : vector<8x128xf32>
    %29 = arith.divf %27, %28 : vector<8x128xf32>
    %30 = vector.extract_strided_slice %23 {offsets = [0, 128], sizes = [8, 128], strides = [1, 1]} : vector<8x512xf32> to vector<8x128xf32>
    %31 = arith.negf %30 : vector<8x128xf32>
    %32 = math.exp %31 : vector<8x128xf32>
    %cst_20 = arith.constant 1.000000e+00 : f32
    %33 = vector.broadcast %cst_20 : f32 to vector<8x128xf32>
    %34 = arith.addf %33, %32 : vector<8x128xf32>
    %35 = arith.divf %33, %34 : vector<8x128xf32>
    %36 = vector.extract_strided_slice %23 {offsets = [0, 256], sizes = [8, 128], strides = [1, 1]} : vector<8x512xf32> to vector<8x128xf32>
    %37 = math.tanh %36 : vector<8x128xf32>
    %38 = vector.extract_strided_slice %23 {offsets = [0, 384], sizes = [8, 128], strides = [1, 1]} : vector<8x512xf32> to vector<8x128xf32>
    %39 = arith.negf %38 : vector<8x128xf32>
    %40 = math.exp %39 : vector<8x128xf32>
    %cst_21 = arith.constant 1.000000e+00 : f32
    %41 = vector.broadcast %cst_21 : f32 to vector<8x128xf32>
    %42 = arith.addf %41, %40 : vector<8x128xf32>
    %43 = arith.divf %41, %42 : vector<8x128xf32>
    %44 = arith.mulf %35, %4 : vector<8x128xf32>
    %45 = arith.mulf %29, %37 : vector<8x128xf32>
    %46 = arith.addf %44, %45 : vector<8x128xf32>
    %47 = math.tanh %46 : vector<8x128xf32>
    %48 = arith.mulf %43, %47 : vector<8x128xf32>
    %c0_22 = arith.constant 0 : index
    %c0_23 = arith.constant 0 : index
    %49 = vector.load %arg14[%c0_22, %c0_23] : memref<8x128xf32, #tpu.memory_space<vmem>>, vector<8x128xf32>
    tpu.vector_store %arg14[%c0_22, %c0_23], %48 {strides = array<i32>} : memref<8x128xf32, #tpu.memory_space<vmem>>, vector<8x128xf32>,
    %c0_24 = arith.constant 0 : index
    %c0_25 = arith.constant 0 : index
    %50 = vector.load %arg15[%c0_24, %c0_25] : memref<8x128xf32, #tpu.memory_space<vmem>>, vector<8x128xf32>
    tpu.vector_store %arg15[%c0_24, %c0_25], %46 {strides = array<i32>} : memref<8x128xf32, #tpu.memory_space<vmem>>, vector<8x128xf32>,
    %51 = arith.truncf %48 : vector<8x128xf32> to vector<8x128xbf16>
    %c0_26 = arith.constant 0 : index
    %c0_27 = arith.constant 0 : index
    %52 = vector.load %arg9[%c0_26, %c0_27] : memref<128x128xbf16, #tpu.memory_space<vmem>>, vector<128x128xbf16>
    %cst_28 = arith.constant dense<0.000000e+00> : vector<8x128xf32>
    %53 = tpu.matmul %51, %52, %cst_28 {dimension_numbers = #tpu.dot_dimension_numbers<[1], [0], [0], [1], [0, 0, 1, 1], [], []>} : vector<8x128xbf16>, vector<128x128xbf16>, vector<8x128xf32> -> vector<8x128xf32>
    %c0_29 = arith.constant 0 : index
    %c0_30 = arith.constant 0 : index
    %54 = vector.load %arg10[%c0_29, %c0_30] : memref<1x128xf32, #tpu.memory_space<vmem>>, vector<1x128xf32>
    %55 = vector.broadcast %54 : vector<1x128xf32> to vector<8x128xf32>
    %56 = arith.addf %53, %55 : vector<8x128xf32>
    %cst_31 = arith.constant dense<0xFF800000> : vector<8xf32>
    %57 = vector.multi_reduction <maximumf>, %56, %cst_31 [1] : vector<8x128xf32> to vector<8xf32>
    %58 = vector.shape_cast %57 : vector<8xf32> to vector<8x1xf32>
    %59 = vector.broadcast %58 : vector<8x1xf32> to vector<8x128xf32>
    %60 = arith.subf %56, %59 : vector<8x128xf32>
    %61 = math.exp %60 : vector<8x128xf32>
    %cst_32 = arith.constant dense<0.000000e+00> : vector<8xf32>
    %62 = vector.multi_reduction <add>, %61, %cst_32 [1] : vector<8x128xf32> to vector<8xf32>
    %63 = vector.shape_cast %62 : vector<8xf32> to vector<8x1xf32>
    %64 = math.log %63 : vector<8x1xf32>
    %65 = vector.broadcast %64 : vector<8x1xf32> to vector<8x128xf32>
    %66 = arith.subf %60, %65 : vector<8x128xf32>
    %c0_33 = arith.constant 0 : index
    %c0_34 = arith.constant 0 : index
    %c0_35 = arith.constant 0 : index
    %67 = vector.load %arg11[%c0_33, %c0_34, %c0_35] : memref<1x8x128xf32, #tpu.memory_space<vmem>>, vector<1x8x128xf32>
    %68 = vector.shape_cast %67 : vector<1x8x128xf32> to vector<8x128xf32>
    %69 = vector.shape_cast %66 : vector<8x128xf32> to vector<1x8x128xf32>
    tpu.vector_store %arg11[%c0_33, %c0_34, %c0_35], %69 {strides = array<i32>} : memref<1x8x128xf32, #tpu.memory_space<vmem>>, vector<1x8x128xf32>,
    %c0_i32_36 = arith.constant 0 : i32
    %70 = arith.cmpi eq, %arg0, %c0_i32_36 : i32
    %71 = arith.extui %70 : i1 to i32
    %c0_i32_37 = arith.constant 0 : i32
    %72 = arith.cmpi ne, %71, %c0_i32_37 : i32
    scf.if %72 {
      %c0_38 = arith.constant 0 : index
      %c0_39 = arith.constant 0 : index
      %73 = vector.load %arg12[%c0_38, %c0_39] : memref<8x128xf32, #tpu.memory_space<vmem>>, vector<8x128xf32>
      tpu.vector_store %arg12[%c0_38, %c0_39], %48 {strides = array<i32>} : memref<8x128xf32, #tpu.memory_space<vmem>>, vector<8x128xf32>,
      %c0_40 = arith.constant 0 : index
      %c0_41 = arith.constant 0 : index
      %74 = vector.load %arg13[%c0_40, %c0_41] : memref<8x128xf32, #tpu.memory_space<vmem>>, vector<8x128xf32>
      tpu.vector_store %arg13[%c0_40, %c0_41], %46 {strides = array<i32>} : memref<8x128xf32, #tpu.memory_space<vmem>>, vector<8x128xf32>,
    } else {
    }
    return
  }
  func.func @transform_0(%arg0: i32) -> (i32, i32, i32) {
    %c0_i32 = arith.constant 0 : i32
    %c0_i32_0 = arith.constant 0 : i32
    %c0_i32_1 = arith.constant 0 : i32
    return %arg0, %c0_i32, %c0_i32_0 : i32, i32, i32
  }
  func.func @transform_1(%arg0: i32) -> (i32, i32) {
    %c0_i32 = arith.constant 0 : i32
    %c0_i32_0 = arith.constant 0 : i32
    %c0_i32_1 = arith.constant 0 : i32
    return %c0_i32, %c0_i32_0 : i32, i32
  }
  func.func @transform_2(%arg0: i32) -> (i32, i32) {
    %c0_i32 = arith.constant 0 : i32
    %c0_i32_0 = arith.constant 0 : i32
    %c0_i32_1 = arith.constant 0 : i32
    return %c0_i32, %c0_i32_0 : i32, i32
  }
  func.func @transform_3(%arg0: i32) -> (i32, i32) {
    %c0_i32 = arith.constant 0 : i32
    %c0_i32_0 = arith.constant 0 : i32
    %c0_i32_1 = arith.constant 0 : i32
    return %c0_i32, %c0_i32_0 : i32, i32
  }
  func.func @transform_4(%arg0: i32) -> (i32, i32) {
    %c0_i32 = arith.constant 0 : i32
    %c0_i32_0 = arith.constant 0 : i32
    %c0_i32_1 = arith.constant 0 : i32
    return %c0_i32, %c0_i32_0 : i32, i32
  }
  func.func @transform_5(%arg0: i32) -> (i32, i32) {
    %c0_i32 = arith.constant 0 : i32
    %c0_i32_0 = arith.constant 0 : i32
    %c0_i32_1 = arith.constant 0 : i32
    return %c0_i32, %c0_i32_0 : i32, i32
  }
  func.func @transform_6(%arg0: i32) -> (i32, i32) {
    %c0_i32 = arith.constant 0 : i32
    %c0_i32_0 = arith.constant 0 : i32
    %c0_i32_1 = arith.constant 0 : i32
    return %c0_i32, %c0_i32_0 : i32, i32
  }
  func.func @transform_7(%arg0: i32) -> (i32, i32) {
    %c0_i32 = arith.constant 0 : i32
    %c0_i32_0 = arith.constant 0 : i32
    %c0_i32_1 = arith.constant 0 : i32
    return %c0_i32, %c0_i32_0 : i32, i32
  }
  func.func @transform_8(%arg0: i32) -> (i32, i32) {
    %c0_i32 = arith.constant 0 : i32
    %c0_i32_0 = arith.constant 0 : i32
    %c0_i32_1 = arith.constant 0 : i32
    return %c0_i32, %c0_i32_0 : i32, i32
  }
  func.func @transform_9(%arg0: i32) -> (i32, i32) {
    %c0_i32 = arith.constant 0 : i32
    %c0_i32_0 = arith.constant 0 : i32
    %c0_i32_1 = arith.constant 0 : i32
    return %c0_i32, %c0_i32_0 : i32, i32
  }
  func.func @transform_10(%arg0: i32) -> (i32, i32, i32) {
    %c0_i32 = arith.constant 0 : i32
    %c0_i32_0 = arith.constant 0 : i32
    %c0_i32_1 = arith.constant 0 : i32
    return %arg0, %c0_i32, %c0_i32_0 : i32, i32, i32
  }
  func.func @transform_11(%arg0: i32) -> (i32, i32) {
    %c0_i32 = arith.constant 0 : i32
    %c0_i32_0 = arith.constant 0 : i32
    %c0_i32_1 = arith.constant 0 : i32
    return %c0_i32, %c0_i32_0 : i32, i32
  }
  func.func @transform_12(%arg0: i32) -> (i32, i32) {
    %c0_i32 = arith.constant 0 : i32
    %c0_i32_0 = arith.constant 0 : i32
    %c0_i32_1 = arith.constant 0 : i32
    return %c0_i32, %c0_i32_0 : i32, i32
  }
}

</mosaic_0001>

<bundles_post_ra>
// kernel: decoder_forward.1
= control target key start
LH: loop header
LB: loop body
LE: loop exit
PB: predicated region body
PF: predicated region fallthrough
CT: control target
= control target key end

     0   :  { %18 = vsyncpa [#allocation5], 0  ;;  %s1498_s0 = inlined_call_operand.vmem [shape: f32[1,8,128], index: 0, kind: input, shape index: {}]   ;;  %s1499_s1 = inlined_call_operand.vmem [shape: f32[8,128], index: 1, kind: input, shape index: {}, may-alias: {1,11}]   ;;  %s1500_s2 = inlined_call_operand.vmem [shape: f32[8,128], index: 2, kind: input, shape index: {}, may-alias: {2,12}]   ;;  %s1501_s3 = inlined_call_operand.vmem [shape: bf16[128,128], index: 3, kind: input, shape index: {}]   ;;  %s1502_s4 = inlined_call_operand.vmem [shape: f32[1,128], index: 4, kind: input, shape index: {}]   ;;  %s1503_s5 = inlined_call_operand.hbm [shape: bf16[128,512], index: 5, kind: input, shape index: {}]   ;;  %s1504_s6 = inlined_call_operand.hbm [shape: bf16[128,512], index: 6, kind: input, shape index: {}]   ;;  %s1505_s7 = inlined_call_operand.vmem [shape: f32[1,512], index: 7, kind: input, shape index: {}]   ;;  %s1506_s8 = inlined_call_operand.hbm [shape: bf16[128,128], index: 8, kind: input, shape index: {}]   ;;  %s1507_s9 = inlined_call_operand.vmem [shape: f32[1,128], index: 9, kind: input, shape index: {}]   ;;  %s1508_s10 = inlined_call_operand.vmem [shape: f32[1,8,128], index: 10, kind: output, shape index: {0}]   ;;  %s1509_s11 = inlined_call_operand.vmem [shape: f32[8,128], index: 11, kind: output, shape index: {1}, may-alias: {1,11}]   ;;  %s1510_s12 = inlined_call_operand.vmem [shape: f32[8,128], index: 12, kind: output, shape index: {2}, may-alias: {2,12}]  }
   0x1   :  { %19 = vsyncpa [#allocation7], 0  ;;  %s1305_s21 = smov [#allocation6]   ;;  %s1306_s23 = smov [#allocation4]  }
   0x2   :  { %s47_s22 = sshll.u32 %s1305_s21, 4  ;;  %s35_s24 = sshll.u32 %s1306_s23, 4  ;;  %s48_s22 = int_to_ptr.vmem [resolvable:$true] %s47_s22  ;;  %s1380_s24 = int_to_ptr.vmem [resolvable:$true] %s35_s24 }
   0x3   :  { %s1235_s27 = scalar_lea.hbm %s1504_s6, 4096 }
   0x4   :  { %p1236_p0 = scmp.ne.s32.totalorder %s1504_s6, %s1235_s27  ;;  %p1239_p1 = scmp.lt.u32.totalorder %s1235_s27, %s1504_s6 }
   0x6   :  { %p1241_p2 = pnand %p1239_p1, %p1236_p0 }
   0x8   :  { %1244 = shalt.err (!%p1241_p2)
}
   0x9   :  { %s1245_s14 = scalar_lea.vmem %s48_s22, 4096  ;;  %p1250_p4 = scmp.lt.s32.totalorder %s48_s22, %s48_s22 }
   0xa   :  { %p1246_p3 = scmp.ne.s32.totalorder %s48_s22, %s1245_s14  ;;  %p1251_p5 = scmp.lt.s32.totalorder %s1245_s14, %s1245_s14 }
   0xc   :  { %p1252_p6 = por %p1251_p5, %p1250_p4 }
   0xe   :  { %p1253_p7 = pnand %p1252_p6, %p1246_p3 }
  0x10   :  { %1256 = shalt.err (!%p1253_p7)
}
  0x11   :  { %s1307_s15 = smov 256   ;;  %s1308_s16 = smov 16  }
  0x12   :  { %53 = dma.hbm_to_vmem [thread:$0]  %s1504_s6, 4096, %s48_s22, [#allocation7], %s1307_s15, %s1307_s15, %s1308_s16  }
  0x13   :  { %s1257_s21 = scalar_lea.hbm %s1503_s5, 4096 }
  0x14   :  { %p1258_p8 = scmp.ne.s32.totalorder %s1503_s5, %s1257_s21  ;;  %p1261_p9 = scmp.lt.u32.totalorder %s1257_s21, %s1503_s5 }
  0x16   :  { %p1263_p10 = pnand %p1261_p9, %p1258_p8 }
  0x18   :  { %1266 = shalt.err (!%p1263_p10)
}
  0x19   :  { %s1267_s28 = scalar_lea.vmem %s1380_s24, 4096  ;;  %p1272_p12 = scmp.lt.s32.totalorder %s1380_s24, %s1380_s24 }
  0x1a   :  { %p1268_p11 = scmp.ne.s32.totalorder %s1380_s24, %s1267_s28  ;;  %p1273_p13 = scmp.lt.s32.totalorder %s1267_s28, %s1267_s28 }
  0x1c   :  { %p1274_p0 = por %p1273_p13, %p1272_p12 }
  0x1e   :  { %p1275_p1 = pnand %p1274_p0, %p1268_p11 }
  0x20   :  { %1278 = shalt.err (!%p1275_p1)
}
  0x21   :  { %41 = dma.hbm_to_vmem [thread:$0]  %s1503_s5, 4096, %s1380_s24, [#allocation5], %s1307_s15, %s1307_s15, %s1308_s16  }
  0x22   :  { %s1309_s29 = smov [#allocation8]   ;;  %s1279_s17 = scalar_lea.hbm %s1506_s8, 1024 }
  0x23   :  { %s61_s30 = sshll.u32 %s1309_s29, 4  ;;  %p1280_p2 = scmp.ne.s32.totalorder %s1506_s8, %s1279_s17  ;;  %s62_s30 = int_to_ptr.vmem [resolvable:$true] %s61_s30 }
  0x24   :  { %p1283_p3 = scmp.lt.u32.totalorder %s1279_s17, %s1506_s8 }
  0x26   :  { %p1285_p4 = pnand %p1283_p3, %p1280_p2 }
  0x28   :  { %1288 = shalt.err (!%p1285_p4)
}
  0x29   :  { %s1289_s23 = scalar_lea.vmem %s62_s30, 1024  ;;  %p1294_p6 = scmp.lt.s32.totalorder %s62_s30, %s62_s30 }
  0x2a   :  { %p1290_p5 = scmp.ne.s32.totalorder %s62_s30, %s1289_s23  ;;  %p1295_p7 = scmp.lt.s32.totalorder %s1289_s23, %s1289_s23 }
  0x2c   :  { %p1296_p8 = por %p1295_p7, %p1294_p6 }
  0x2e   :  { %p1297_p9 = pnand %p1296_p8, %p1290_p5 }
  0x30   :  { %1300 = shalt.err (!%p1297_p9)
}
  0x31   :  { %s1310_s5 = smov 64   ;;  %s1311_s24 = smov 4  }
  0x32   :  { %67 = dma.hbm_to_vmem [thread:$0]  %s1506_s8, 1024, %s62_s30, [#allocation7], %s1310_s5, %s1310_s5, %s1311_s24  }
  0x33   :  { %1301 = dma.done.wait [#allocation5], 4096  }
  0x34   :  { %1302 = vsyncadd [#allocation5], 4294963200 }
  0x35   :  { %1303 = dma.done.wait [#allocation7], 5120  }
  0x36   :  { %1304 = vsyncadd [#allocation7], 4294962176  ;;  %v1312_v0 = vmov 0.0   ;;  %vm1313_vm0 = vmmov 0   ;;  %v1314_v1 = vmov 0   ;;  %v1101_v2 = vld [vmem:[%s1501_s3] sm:$0xff]  }
  0x37   :  { %1051 = vmatprep.subr.bf16.mxu0 %v1312_v0  ;;  %1067 = vmatprep.mubr.msk.bf16.mxu0 %vm1313_vm0, %v1312_v0  ;;  %v1102_v3 = vld [vmem:[%s1501_s3 + $0x8] sm:$0xff]   ;;  %v1103_v4 = vld [vmem:[%s1501_s3 + $0x10] sm:$0xff]   ;;  %v1104_v7 = vld [vmem:[%s1501_s3 + $0x18] sm:$0xff]  }
  0x38   :  { %462 = vmatprep.mubr.bf16.mxu1 %v1314_v1  ;;  %1052 = vmatpush3.bf16.msra.mxu0 %v1101_v2  ;;  %v1109_v5 = vld [vmem:[#allocation6 + $0x4] ss:$16 sps:$4 sm:$0xff]   ;;  %v1111_v6 = vld [vmem:[#allocation6] ss:$16 sps:$4 sm:$0xff]   ;;  %v1106_v14 = vld [vmem:[%s1501_s3 + $0x28] sm:$0xff]  }
  0x39   :  { %1053 = vmatprep.subr.bf16.mxu0 %v1312_v0  ;;  %430 = vmatprep.subr.bf16.mxu1 %v1109_v5  ;;  %v1115_v8 = vld [vmem:[#allocation6 + $0x24] ss:$16 sps:$4 sm:$0xff]   ;;  %v1117_v9 = vld [vmem:[#allocation6 + $0x20] ss:$16 sps:$4 sm:$0xff]   ;;  %v1108_v20 = vld [vmem:[%s1501_s3 + $0x38] sm:$0xff]  }
  0x3a   :  { %431 = vmatpush1.bf16.msra.mxu1 %v1111_v6  ;;  %v1105_v10 = vld [vmem:[%s1501_s3 + $0x20] sm:$0xff]   ;;  %v1107_v17 = vld [vmem:[%s1501_s3 + $0x30] sm:$0xff]   ;;  %v1114_v22 = vld [vmem:[#allocation6 + $0xc] ss:$16 sps:$4 sm:$0xff]  }
  0x3b   :  { %432 = vmatprep.subr.bf16.mxu1 %v1115_v8  ;;  %v1121_v11 = vld [vmem:[#allocation6 + $0x44] ss:$16 sps:$4 sm:$0xff]   ;;  %v1123_v12 = vld [vmem:[#allocation6 + $0x40] ss:$16 sps:$4 sm:$0xff]   ;;  %v1112_v26 = vld [vmem:[#allocation6 + $0x8] ss:$16 sps:$4 sm:$0xff]  }
  0x3c   :  { %1054 = vmatpush3.bf16.msra.mxu0 %v1102_v3  ;;  %v1127_v13 = vld [vmem:[#allocation6 + $0x64] ss:$16 sps:$4 sm:$0xff]   ;;  %v1129_v15 = vld [vmem:[#allocation6 + $0x60] ss:$16 sps:$4 sm:$0xff]   ;;  %v1120_v27 = vld [vmem:[#allocation6 + $0x2c] ss:$16 sps:$4 sm:$0xff]  }
  0x3d   :  { %1055 = vmatprep.subr.bf16.mxu0 %v1312_v0  ;;  %v1133_v16 = vld [vmem:[#allocation6 + $0x84] ss:$16 sps:$4 sm:$0xff]   ;;  %v1135_v18 = vld [vmem:[#allocation6 + $0x80] ss:$16 sps:$4 sm:$0xff]   ;;  %v1118_v30 = vld [vmem:[#allocation6 + $0x28] ss:$16 sps:$4 sm:$0xff]  }
  0x3e   :  { %433 = vmatpush1.bf16.msra.mxu1 %v1117_v9  ;;  %v1139_v19 = vld [vmem:[#allocation6 + $0xa4] ss:$16 sps:$4 sm:$0xff]   ;;  %v1141_v23 = vld [vmem:[#allocation6 + $0xa0] ss:$16 sps:$4 sm:$0xff]   ;;  %v1126_v31 = vld [vmem:[#allocation6 + $0x4c] ss:$16 sps:$4 sm:$0xff]  }
  0x3f   :  { %434 = vmatprep.subr.bf16.mxu1 %v1121_v11  ;;  %v90_v21 = vld [vmem:[%s1498_s0] sm:$0xff]  ;;  %v1124_v35 = vld [vmem:[#allocation6 + $0x48] ss:$16 sps:$4 sm:$0xff]   ;;  %v1132_v36 = vld [vmem:[#allocation6 + $0x6c] ss:$16 sps:$4 sm:$0xff]  }
  0x40   :  { %1056 = vmatpush3.bf16.msra.mxu0 %v1103_v4  ;;  %v91_v24 = vpack.c.bf16 %v90_v21, %v90_v21  ;;  %v1145_v25 = vld [vmem:[#allocation6 + $0xc4] ss:$16 sps:$4 sm:$0xff]   ;;  %v1147_v28 = vld [vmem:[#allocation6 + $0xc0] ss:$16 sps:$4 sm:$0xff]   ;;  %v1130_v38 = vld [vmem:[#allocation6 + $0x68] ss:$16 sps:$4 sm:$0xff]  }
  0x41   :  { %1057 = vmatprep.subr.bf16.mxu0 %v1312_v0  ;;  %v1151_v29 = vld [vmem:[#allocation6 + $0xe4] ss:$16 sps:$4 sm:$0xff]   ;;  %v1153_v32 = vld [vmem:[#allocation6 + $0xe0] ss:$16 sps:$4 sm:$0xff]   ;;  %v1138_v41 = vld [vmem:[#allocation6 + $0x8c] ss:$16 sps:$4 sm:$0xff]  }
  0x42   :  { %435 = vmatpush1.bf16.msra.mxu1 %v1123_v12  ;;  %v84_v33 = vld [vmem:[%s1499_s1] sm:$0xff]  ;;  %v1136_v44 = vld [vmem:[#allocation6 + $0x88] ss:$16 sps:$4 sm:$0xff]   ;;  %v1144_v45 = vld [vmem:[#allocation6 + $0xac] ss:$16 sps:$4 sm:$0xff]  }
  0x43   :  { %436 = vmatprep.subr.bf16.mxu1 %v1127_v13  ;;  %v1159_v34 = vld [vmem:[#allocation4 + $0x4] ss:$16 sps:$4 sm:$0xff]   ;;  %v237_v37 = vpack.c.bf16 %v84_v33, %v84_v33  ;;  %v1157_v39 = vld [vmem:[#allocation4] ss:$16 sps:$4 sm:$0xff]   ;;  %v1142_v48 = vld [vmem:[#allocation6 + $0xa8] ss:$16 sps:$4 sm:$0xff]  }
  0x44   :  { %1058 = vmatpush3.bf16.msra.mxu0 %v1104_v7  ;;  %v1165_v40 = vld [vmem:[#allocation4 + $0x24] ss:$16 sps:$4 sm:$0xff]   ;;  %v1163_v42 = vld [vmem:[#allocation4 + $0x20] ss:$16 sps:$4 sm:$0xff]   ;;  %v1150_v49 = vld [vmem:[#allocation6 + $0xcc] ss:$16 sps:$4 sm:$0xff]  }
  0x45   :  { %1059 = vmatprep.subr.bf16.mxu0 %v1312_v0  ;;  %v1171_v43 = vld [vmem:[#allocation4 + $0x44] ss:$16 sps:$4 sm:$0xff]   ;;  %v1169_v46 = vld [vmem:[#allocation4 + $0x40] ss:$16 sps:$4 sm:$0xff]   ;;  %v1148_v51 = vld [vmem:[#allocation6 + $0xc8] ss:$16 sps:$4 sm:$0xff]  }
  0x46   :  { %437 = vmatpush1.bf16.msra.mxu1 %v1129_v15  ;;  %v1177_v47 = vld [vmem:[#allocation4 + $0x64] ss:$16 sps:$4 sm:$0xff]   ;;  %v1175_v50 = vld [vmem:[#allocation4 + $0x60] ss:$16 sps:$4 sm:$0xff]   ;;  %v1156_v52 = vld [vmem:[#allocation6 + $0xec] ss:$16 sps:$4 sm:$0xff]  }
  0x47   :  { %438 = vmatprep.subr.bf16.mxu1 %v1133_v16  ;;  %v1154_v53 = vld [vmem:[#allocation6 + $0xe8] ss:$16 sps:$4 sm:$0xff]   ;;  %v1162_v54 = vld [vmem:[#allocation4 + $0xc] ss:$16 sps:$4 sm:$0xff]   ;;  %v1183_v62 = vld [vmem:[#allocation4 + $0x84] ss:$16 sps:$4 sm:$0xff]  }
  0x48   :  { %1060 = vmatpush3.bf16.msra.mxu0 %v1105_v10  ;;  %v1160_v55 = vld [vmem:[#allocation4 + $0x8] ss:$16 sps:$4 sm:$0xff]   ;;  %v1168_v56 = vld [vmem:[#allocation4 + $0x2c] ss:$16 sps:$4 sm:$0xff]   ;;  %v1181_v2 = vld [vmem:[#allocation4 + $0x80] ss:$16 sps:$4 sm:$0xff]  }
  0x49   :  { %1061 = vmatprep.subr.bf16.mxu0 %v1312_v0  ;;  %v1166_v57 = vld [vmem:[#allocation4 + $0x28] ss:$16 sps:$4 sm:$0xff]   ;;  %v1174_v58 = vld [vmem:[#allocation4 + $0x4c] ss:$16 sps:$4 sm:$0xff]   ;;  %v1189_v4 = vld [vmem:[#allocation4 + $0xa4] ss:$16 sps:$4 sm:$0xff]  }
  0x4a   :  { %439 = vmatpush1.bf16.msra.mxu1 %v1135_v18  ;;  %v1172_v59 = vld [vmem:[#allocation4 + $0x48] ss:$16 sps:$4 sm:$0xff]   ;;  %v1180_v60 = vld [vmem:[#allocation4 + $0x6c] ss:$16 sps:$4 sm:$0xff]   ;;  %v1187_v5 = vld [vmem:[#allocation4 + $0xa0] ss:$16 sps:$4 sm:$0xff]  }
  0x4b   :  { %440 = vmatprep.subr.bf16.mxu1 %v1139_v19  ;;  %v1178_v61 = vld [vmem:[#allocation4 + $0x68] ss:$16 sps:$4 sm:$0xff]   ;;  %v1186_v63 = vld [vmem:[#allocation4 + $0x8c] ss:$16 sps:$4 sm:$0xff]   ;;  %v1195_v7 = vld [vmem:[#allocation4 + $0xc4] ss:$16 sps:$4 sm:$0xff]  }
  0x4c   :  { %1062 = vmatpush3.bf16.msra.mxu0 %v1106_v14  ;;  %v1184_v3 = vld [vmem:[#allocation4 + $0x88] ss:$16 sps:$4 sm:$0xff]   ;;  %v1198_v8 = vld [vmem:[#allocation4 + $0xcc] ss:$16 sps:$4 sm:$0xff]   ;;  %v1193_v9 = vld [vmem:[#allocation4 + $0xc0] ss:$16 sps:$4 sm:$0xff]  }
  0x4d   :  { %1063 = vmatprep.subr.bf16.mxu0 %v1312_v0  ;;  %v1190_v6 = vld [vmem:[#allocation4 + $0xa8] ss:$16 sps:$4 sm:$0xff]   ;;  %v1201_v11 = vld [vmem:[#allocation4 + $0xe4] ss:$16 sps:$4 sm:$0xff]   ;;  %v1204_v12 = vld [vmem:[#allocation4 + $0xec] ss:$16 sps:$4 sm:$0xff]  }
  0x4e   :  { %441 = vmatpush1.bf16.msra.mxu1 %v1141_v23  ;;  %v1196_v10 = vld [vmem:[#allocation4 + $0xc8] ss:$16 sps:$4 sm:$0xff]   ;;  %v1199_v13 = vld [vmem:[#allocation4 + $0xe0] ss:$16 sps:$4 sm:$0xff]  }
  0x4f   :  { %442 = vmatprep.subr.bf16.mxu1 %v1145_v25  ;;  %v1202_v14 = vld [vmem:[#allocation4 + $0xe8] ss:$16 sps:$4 sm:$0xff]   ;;  %v948_v15 = vld [vmem:[%s1502_s4] ss:$0 sm:$0xff]  ;;  %v1207_v33 = vld [vmem:[#allocation8 + $0x10] sm:$0xff]  }
  0x50   :  { %1064 = vmatpush3.bf16.msra.mxu0 %v1107_v17 }
  0x51   :  { %1065 = vmatprep.subr.bf16.mxu0 %v1312_v0 }
  0x52   :  { %443 = vmatpush1.bf16.msra.mxu1 %v1147_v28 }
  0x53   :  { %444 = vmatprep.subr.bf16.mxu1 %v1151_v29 }
  0x54   :  { %1066 = vmatpush3.bf16.msra.mxu0 %v1108_v20 }
  0x55   :  { %471 = vmatprep.subr.bf16.mxu0 %v1114_v22 }
  0x56   :  { %445 = vmatpush1.bf16.msra.mxu1 %v1153_v32  ;;  %v1206_v32 = vld [vmem:[#allocation8 + $0x8] sm:$0xff]  }
  0x57   :  { %1068 = vmatmul.mubr.bf16.vlgmr.msra.gmra.mrb[0].mxu0 %v91_v24  ;;  %672 = vmatprep.subr.bf16.mxu1 %v1159_v34  ;;  %v1208_v34 = vld [vmem:[#allocation8 + $0x18] sm:$0xff]  }
  0x58   :  { %472 = vmatpush1.bf16.msra.mxu0 %v1112_v26  ;;  %503 = vmatprep.mubr.bf16.mxu0 %v1314_v1 }
  0x59   :  { %473 = vmatprep.subr.bf16.mxu0 %v1120_v27  ;;  %463 = vmatmul.mubr.bf16.vlgmr.msra.gmra.mrb[0].mxu1 %v237_v37 }
  0x5a   :  { %673 = vmatpush1.bf16.msra.mxu1 %v1157_v39  ;;  %704 = vmatprep.mubr.bf16.mxu1 %v1314_v1  ;;  %v756_v39 = vlaneseq }
  0x5b   :  { %674 = vmatprep.subr.bf16.mxu1 %v1165_v40 }
  0x5c   :  { %474 = vmatpush1.bf16.msra.mxu0 %v1118_v30  ;;  %v757_v40 = vshrl.u32 %v756_v39, 7 }
  0x5d   :  { %475 = vmatprep.subr.bf16.mxu0 %v1126_v31  ;;  %v1205_v31 = vld [vmem:[#allocation8] sm:$0xff]  }
  0x5e   :  { %675 = vmatpush1.bf16.msra.mxu1 %v1163_v42  ;;  %v754_v42 = vld [vmem:[%s1505_s7] sm:$0xf] }
  0x5f   :  { %676 = vmatprep.subr.bf16.mxu1 %v1171_v43  ;;  %v762_v43 = vsub.s32 1, %v757_v40 }
  0x60   :  { %476 = vmatpush1.bf16.msra.mxu0 %v1124_v35  ;;  %v1209_v35 = vld [vmem:[#allocation8 + $0x20] sm:$0xff]  }
  0x61   :  { %477 = vmatprep.subr.bf16.mxu0 %v1132_v36  ;;  %v1210_v36 = vld [vmem:[#allocation8 + $0x28] sm:$0xff]  }
  0x62   :  { %677 = vmatpush1.bf16.msra.mxu1 %v1169_v46 }
  0x63   :  { %678 = vmatprep.subr.bf16.mxu1 %v1177_v47  ;;  %v763_v47 = vrot.slane %v754_v42, %v762_v43 }
  0x64   :  { %478 = vmatpush1.bf16.msra.mxu0 %v1130_v38  ;;  %v1212_v38 = vld [vmem:[#allocation8 + $0x38] sm:$0xff]  }
  0x65   :  { %479 = vmatprep.subr.bf16.mxu0 %v1138_v41  ;;  %v758_v41 = vsub.s32 0, %v757_v40 }
  0x66   :  { %679 = vmatpush1.bf16.msra.mxu1 %v1175_v50 }
  0x67   :  { %680 = vmatprep.subr.bf16.mxu1 %v1183_v62 }
  0x68   :  { %480 = vmatpush1.bf16.msra.mxu0 %v1136_v44  ;;  %v759_v44 = vrot.slane %v754_v42, %v758_v41 }
  0x69   :  { %481 = vmatprep.subr.bf16.mxu0 %v1144_v45 }
  0x6a   :  { %681 = vmatpush1.bf16.msra.mxu1 %v1181_v2 }
  0x6b   :  { %682 = vmatprep.subr.bf16.mxu1 %v1189_v4 }
  0x6c   :  { %482 = vmatpush1.bf16.msra.mxu0 %v1142_v48 }
  0x6d   :  { %483 = vmatprep.subr.bf16.mxu0 %v1150_v49 }
  0x6e   :  { %683 = vmatpush1.bf16.msra.mxu1 %v1187_v5 }
  0x6f   :  { %684 = vmatprep.subr.bf16.mxu1 %v1195_v7 }
  0x70   :  { %484 = vmatpush1.bf16.msra.mxu0 %v1148_v51 }
  0x71   :  { %485 = vmatprep.subr.bf16.mxu0 %v1156_v52 }
  0x72   :  { %685 = vmatpush1.bf16.msra.mxu1 %v1193_v9 }
  0x73   :  { %686 = vmatprep.subr.bf16.mxu1 %v1201_v11  ;;  %v86_v11 = vld [vmem:[%s1500_s2] sm:$0xff] }
  0x74   :  { %486 = vmatpush1.bf16.msra.mxu0 %v1154_v53 }
  0x75   :  { %713 = vmatprep.subr.bf16.mxu0 %v1162_v54 }
  0x76   :  { %687 = vmatpush1.bf16.msra.mxu1 %v1199_v13 }
  0x77   :  { %504 = vmatmul.mubr.bf16.vlgmr.msra.gmra.mrb[4].mxu0 %v237_v37  ;;  %1071 = vmatprep.subr.bf16.mxu1 %v1312_v0  ;;  %v1211_v37 = vld [vmem:[#allocation8 + $0x30] sm:$0xff]  }
  0x78   :  { %714 = vmatpush1.bf16.msra.mxu0 %v1160_v55  ;;  %745 = vmatprep.mubr.bf16.mxu0 %v1314_v1  ;;  %v1192_v1 = vld [vmem:[#allocation4 + $0xac] ss:$16 sps:$4 sm:$0xff]  }
  0x79   :  { %715 = vmatprep.subr.bf16.mxu0 %v1168_v56 }
  0x7c   :  { %716 = vmatpush1.bf16.msra.mxu0 %v1166_v57 }
  0x7d   :  { %717 = vmatprep.subr.bf16.mxu0 %v1174_v58 }
  0x80   :  { %718 = vmatpush1.bf16.msra.mxu0 %v1172_v59 }
  0x81   :  { %719 = vmatprep.subr.bf16.mxu0 %v1180_v60 }
  0x84   :  { %720 = vmatpush1.bf16.msra.mxu0 %v1178_v61 }
  0x85   :  { %721 = vmatprep.subr.bf16.mxu0 %v1186_v63  ;;  %v766_v63 = vsub.s32 2, %v757_v40 }
  0x88   :  { %722 = vmatpush1.bf16.msra.mxu0 %v1184_v3  ;;  %v767_v3 = vrot.slane %v754_v42, %v766_v63 }
  0x89   :  { %723 = vmatprep.subr.bf16.mxu0 %v1192_v1 }
  0x8c   :  { %724 = vmatpush1.bf16.msra.mxu0 %v1190_v6 }
  0x8d   :  { %725 = vmatprep.subr.bf16.mxu0 %v1198_v8 }
  0x90   :  { %726 = vmatpush1.bf16.msra.mxu0 %v1196_v10 }
  0x91   :  { %727 = vmatprep.subr.bf16.mxu0 %v1204_v12 }
  0x94   :  { %728 = vmatpush1.bf16.msra.mxu0 %v1202_v14 }
 0x12a   :  { %v197_v16 = vpop.f32.mrb[0].mxu0 }
 0x12b   :  { %v198_v17 = vadd.f32 %v948_v15, %v197_v16  ;;  %v1069_v18 = vpop.f32.mrb[1].mxu0 }
 0x12c   :  { %v200_v19 = vpop.f32.mrb[2].mxu0  ;;  %v464_v21 = vpop.f32.mrb[0].mxu1 }
 0x12d   :  { %1213 = vtanh.f32 %v198_v17  ;;  %v1070_v20 = vpop.f32.mrb[3].mxu0  ;;  %v466_v22 = vpop.f32.mrb[1].mxu1 }
 0x12e   :  { %v468_v23 = vpop.f32.mrb[2].mxu1 }
 0x12f   :  { %v469_v25 = vpop.f32.mrb[3].mxu1 }
 0x137   :  { %v1214_v24 = vpop.eup %1213 }
 0x138   :  { %v204_v26 = vpack.c.bf16 %v1214_v24, %v1214_v24 }
 0x13a   :  { %705 = vmatmul.mubr.bf16.vlgmr.msra.gmra.mrb[4].mxu1 %v204_v26  ;;  %746 = vmatmul.mubr.bf16.vlgmr.msra.gmra.mrb[8].mxu0 %v204_v26 }
 0x13b   :  { %1087 = vmatprep.mubr.msk.bf16.mxu1 %vm1313_vm0, %v1312_v0  ;;  %1072 = vmatpush3.bf16.msra.mxu1 %v1205_v31 }
 0x13c   :  { %1073 = vmatprep.subr.bf16.mxu1 %v1312_v0 }
 0x13f   :  { %1074 = vmatpush3.bf16.msra.mxu1 %v1206_v32 }
 0x140   :  { %1075 = vmatprep.subr.bf16.mxu1 %v1312_v0 }
 0x143   :  { %1076 = vmatpush3.bf16.msra.mxu1 %v1207_v33 }
 0x144   :  { %1077 = vmatprep.subr.bf16.mxu1 %v1312_v0 }
 0x147   :  { %1078 = vmatpush3.bf16.msra.mxu1 %v1208_v34 }
 0x148   :  { %1079 = vmatprep.subr.bf16.mxu1 %v1312_v0 }
 0x14a   :  { %v505_v27 = vpop.f32.mrb[4].mxu0 }
 0x14b   :  { %v507_v28 = vpop.f32.mrb[5].mxu0  ;;  %1080 = vmatpush3.bf16.msra.mxu1 %v1209_v35 }
 0x14c   :  { %v509_v29 = vpop.f32.mrb[6].mxu0  ;;  %1081 = vmatprep.subr.bf16.mxu1 %v1312_v0 }
 0x14d   :  { %v510_v30 = vpop.f32.mrb[7].mxu0 }
 0x14f   :  { %1082 = vmatpush3.bf16.msra.mxu1 %v1210_v36 }
 0x150   :  { %1083 = vmatprep.subr.bf16.mxu1 %v1312_v0 }
 0x153   :  { %1084 = vmatpush3.bf16.msra.mxu1 %v1211_v37 }
 0x154   :  { %1085 = vmatprep.subr.bf16.mxu1 %v1312_v0  ;;  %v770_v0 = vsub.s32 3, %v757_v40 }
 0x156   :  { %v771_v62 = vrot.slane %v754_v42, %v770_v0 }
 0x157   :  { %1086 = vmatpush3.bf16.msra.mxu1 %v1212_v38 }
 0x20d   :  { %v706_v45 = vpop.f32.mrb[4].mxu1  ;;  %v747_v46 = vpop.f32.mrb[8].mxu0 }
 0x20e   :  { %v707_v48 = vadd.f32 %v706_v45, %v464_v21  ;;  %v748_v49 = vadd.f32 %v747_v46, %v505_v27  ;;  %v708_v50 = vpop.f32.mrb[5].mxu1  ;;  %v749_v51 = vpop.f32.mrb[9].mxu0 }
 0x20f   :  { %v709_v52 = vadd.f32 %v708_v50, %v466_v22  ;;  %v750_v53 = vadd.f32 %v749_v51, %v507_v28  ;;  %v710_v54 = vpop.f32.mrb[6].mxu1  ;;  %v751_v55 = vpop.f32.mrb[10].mxu0  ;;  %v1024_v22 = vld [vmem:[%s1507_s9] ss:$0 sm:$0xff] }
 0x210   :  { %v776_v56 = vadd.f32 %v759_v44, %v707_v48  ;;  %v711_v57 = vpop.f32.mrb[7].mxu1  ;;  %v752_v58 = vpop.f32.mrb[11].mxu0  ;;  %v778_v1 = vadd.f32 %v767_v3, %v748_v49 }
 0x211   :  { %v777_v59 = vadd.f32 %v763_v47, %v709_v52  ;;  %v779_v2 = vadd.f32 %v771_v62, %v750_v53 }
 0x212   :  { %v1021_v60 = vmul.f32 -1.442695, %v776_v56 }
 0x213   :  { %v1022_v61 = vmul.f32 -1.442695, %v777_v59  ;;  %v1023_v4 = vmul.f32 -1.442695, %v779_v2 }
 0x214   :  { %1215 = vpow2.f32 %v1021_v60 }
 0x215   :  { %1217 = vpow2.f32 %v1022_v61 }
 0x216   :  { %1219 = vpow2.f32 %v1023_v4 }
 0x217   :  { %1221 = vtanh.f32 %v778_v1 }
 0x21e   :  { %v1216_v5 = vpop.eup %1215 }
 0x21f   :  { %v1218_v6 = vpop.eup %1217  ;;  %v783_v7 = vadd.f32 1.0, %v1216_v5 }
 0x220   :  { %v789_v8 = vadd.f32 1.0, %v1218_v6  ;;  %v1220_v9 = vpop.eup %1219 }
 0x221   :  { %1223 = vrcp.f32 %v783_v7  ;;  %v1222_v10 = vpop.eup %1221  ;;  %v796_v15 = vadd.f32 1.0, %v1220_v9 }
 0x222   :  { %1225 = vrcp.f32 %v789_v8 }
 0x223   :  { %1227 = vrcp.f32 %v796_v15 }
 0x22b   :  { %v1224_v12 = vpop.eup %1223 }
 0x22c   :  { %v1226_v13 = vpop.eup %1225  ;;  %v800_v14 = vmul.f32 %v1224_v12, %v1222_v10 }
 0x22d   :  { %v799_v16 = vmul.f32 %v1226_v13, %v86_v11  ;;  %v1228_v18 = vpop.eup %1227 }
 0x22f   :  { %v801_v17 = vadd.f32 %v800_v14, %v799_v16 }
 0x231   :  { %933 = vst [vmem:[%s1510_s12] sm:$0xff] %v801_v17  ;;  %1229 = vtanh.f32 %v801_v17 }
 0x23b   :  { %v1230_v19 = vpop.eup %1229 }
 0x23c   :  { %v803_v20 = vmul.f32 %v1230_v19, %v1228_v18 }
 0x23e   :  { %v806_v21 = vpack.c.bf16 %v803_v20, %v803_v20  ;;  %932 = vst [vmem:[%s1509_s11] sm:$0xff] %v803_v20 }
 0x240   :  { %1088 = vmatmul.mubr.bf16.vlgmr.msra.gmra.mrb[8].mxu1 %v806_v21 }
 0x313   :  { %v912_v23 = vpop.f32.mrb[8].mxu1 }
 0x314   :  { %v913_v24 = vadd.f32 %v1024_v22, %v912_v23  ;;  %v1089_v25 = vpop.f32.mrb[9].mxu1 }
 0x315   :  { %v915_v26 = vpop.f32.mrb[10].mxu1 }
 0x316   :  { %918 = vmax.xlane.f32.xlu0 %v913_v24  ;;  %v1090_v27 = vpop.f32.mrb[11].mxu1 }
 0x3a3   :  { %v919_v28 = vpop.xlane.xlu0 %918 }
 0x3a4   :  { %v920_v29 = vsub.f32 %v913_v24, %v919_v28 }
 0x3a6   :  { %v921_v30 = vmul.f32 1.442695, %v920_v29 }
 0x3a8   :  { %1231 = vpow2.f32 %v921_v30 }
 0x3b2   :  { %v1232_v31 = vpop.eup %1231 }
 0x3b3   :  { %923 = vadd.xlane.f32.xlu0 %v1232_v31 }
 0x440   :  { %v924_v32 = vpop.xlane.xlu0 %923 }
 0x441   :  { %1233 = vlog2.f32 %v924_v32 }
 0x44b   :  { %v1234_v33 = vpop.eup %1233 }
 0x44c   :  { %v926_v34 = vmul.f32 0.6931472, %v1234_v33 }
 0x44e   :  { %v927_v35 = vsub.f32 %v920_v29, %v926_v34 }
 0x450   :  { %928 = vst [vmem:[%s1508_s10] sm:$0xff] %v927_v35 }
 0x451   :  { %946 = vsyncpa [#allocation5], 1 }
 0x452   :  { %947 = vsyncpa [#allocation7], 1 }

</bundles_post_ra>
